<compile_context>
chip_gen: v7x
topology: tpu7x:2x2x1
jax: 0.10.0
libtpu: 0.0.40
codegen_flags: <defaults>
</compile_context>

<pallas_src>
import functools

import jax
import jax.numpy as jnp
from jax.experimental import pallas as pl
from jax.experimental.pallas import tpu as pltpu


# ======================== fused Pallas kernel ============================================

def _film_resblk_kernel(xw_ref, z_ref, w1_ref, b1_ref, w2_ref, shift_ref,
                        fwg_ref, fwb_ref, fbg_ref, fbb_ref, out_ref,
                        *, ks, pad, seq_len, act):
    """One (batch, time-tile) grid step, channels x time layout (time = lane dimension).

    xw_ref   : (Cin,  T_tile + 4*pad)  overlapping input window, f32
    z_ref    : (z_dim, 1)
    w1_ref   : (Cout, ks*Cin)    conv1 weight, taps flattened into the contraction dim
    b1_ref   : (Cout, 1)         conv1 bias
    w2_ref   : (Cout, ks*Cout)   conv2 weight with the BatchNorm scale folded in
    shift_ref: (Cout, 1)         (b_conv - bn_mean)*scale + bn_beta
    fwg/fwb  : (Cout, z_dim)     FiLM linear, gamma / beta halves
    fbg/fbb  : (Cout, 1)         gamma bias (FiLM "+1" folded in) / beta bias
    out_ref  : (Cout, T_tile)    lane-dense output tile in PyTorch (C, T) orientation
    """
    Cout, T_tile = out_ref.shape
    Th = T_tile + 2 * pad                       # h is produced with a +-pad halo for conv2
    mmt = w1_ref.dtype                          # matmul operand dtype (bf16 or f32)

    # ---- self.pre : Conv1d -> Tanh  (one im2col matmul on the MXU) --------------------------
    x = xw_ref[...].astype(mmt)                                           # (Cin, T_tile+4p)
    x1 = jnp.concatenate([x[:, k:k + Th] for k in range(ks)], axis=0)     # (ks*Cin, Th)
    h = jnp.dot(w1_ref[...], x1, preferred_element_type=jnp.float32) + b1_ref[...]
    h = jnp.tanh(h)                                                       # (Cout, Th) f32

    # Zero h outside the real sequence [0, seq_len): PyTorch's conv2 zero-pads h, and the tail
    # tile may extend past T.  (t = global time index of each halo column.)
    t = (pl.program_id(1) * T_tile - pad) + jax.lax.broadcasted_iota(jnp.int32, (1, Th), 1)
    h = jnp.where((t >= 0) & (t < seq_len), h, 0.0)

    # ---- self.conv : Conv1d + BatchNorm1d (scale folded into w2, the rest into shift) -------
    hm = h.astype(mmt)
    x2 = jnp.concatenate([hm[:, k:k + T_tile] for k in range(ks)], axis=0)  # (ks*Cout, T_tile)
    y = jnp.dot(w2_ref[...], x2, preferred_element_type=jnp.float32) + shift_ref[...]

    # ---- self.film : (1+gamma)*y + beta with gamma/beta = Linear(z) --------------------------
    # Tiny GEMV recomputed per tile: negligible vs the conv matmuls and it keeps BOTH grid axes
    # "parallel" (no persistent-scratch ordering hazard across megacore shards).
    zc = z_ref[...].astype(mmt)                                           # (z_dim, 1)
    g1 = jnp.dot(fwg_ref[...], zc, preferred_element_type=jnp.float32) + fbg_ref[...]  # 1+gamma
    bt = jnp.dot(fwb_ref[...], zc, preferred_element_type=jnp.float32) + fbb_ref[...]  # beta
    y = g1 * y + bt

    # ---- self.ac (free ctor arg; ReLU chosen) -------------------------------------------------
    if act == "relu":
        y = jnp.maximum(y, 0.0)
    elif act == "tanh":
        y = jnp.tanh(y)
    # act is None -> identity

    # ---- residual around the pre output; lane-dense store (time = lanes) ---------------------
    out_ref[...] = (h[:, pad:pad + T_tile] + y).astype(out_ref.dtype)


# ======================== wrapper (PyTorch NCT interface) ================================

def film_res_blk_forward(x, z, params, *, ks, act="relu", eps=1e-5,
                         t_tile=512, mm_dtype=jnp.bfloat16):
    """x: (B, in_ch, T), z: (B, z_dim) -> (B, out_ch, T)  (PyTorch layout in and out)."""
    assert ks % 2 == 1, "Conv1d(padding=ks//2) is length-preserving only for odd kernel_size"
    B, Cin, T = x.shape
    Cout = params["w_pre"].shape[-1]
    z_dim = z.shape[-1]
    pad = ks // 2
    f32 = jnp.float32

    # ---- time tiling: lane-dense tiles (multiple of 128) unless T fits one tile --------------
    if T <= t_tile:
        T_tile, nT = T, 1
    else:
        assert t_tile % 128 == 0, "tiled path needs a lane-dense (multiple-of-128) time tile"
        T_tile, nT = t_tile, pl.cdiv(T, t_tile)
    T_padded = nT * T_tile
    T_win = T_tile + 4 * pad          # +-pad halo for conv2's h, +-pad more to recompute that h

    # ---- offline parameter folding (tiny, runs once inside the surrounding jit) --------------
    w1 = jnp.transpose(params["w_pre"].astype(f32).reshape(ks * Cin, Cout)).astype(mm_dtype)
    b1 = params["b_pre"].astype(f32).reshape(Cout, 1)
    scale = params["bn_gamma"].astype(f32) * jax.lax.rsqrt(params["bn_var"].astype(f32) + eps)
    w2 = jnp.transpose(params["w_conv"].astype(f32).reshape(ks * Cout, Cout) * scale
                       ).astype(mm_dtype)                                   # BN scale folded
    shift = ((params["b_conv"].astype(f32) - params["bn_mean"].astype(f32)) * scale
             + params["bn_beta"].astype(f32)).reshape(Cout, 1)
    fcw = params["fc_w"].astype(f32)
    fwg = jnp.transpose(fcw[:, :Cout]).astype(mm_dtype)                     # (Cout, z_dim)
    fwb = jnp.transpose(fcw[:, Cout:]).astype(mm_dtype)
    fcb = params["fc_b"].astype(f32).reshape(2 * Cout)
    fbg = (1.0 + fcb[:Cout]).reshape(Cout, 1)                               # FiLM "+1" folded
    fbb = fcb[Cout:].reshape(Cout, 1)

    # ---- overlapping (halo) input windows, built once in HBM; overlap = 4*pad/T_tile ----------
    x_pad = jnp.pad(x.astype(f32), ((0, 0), (0, 0), (2 * pad, 2 * pad + T_padded - T)))
    col = ((jnp.arange(nT, dtype=jnp.int32) * T_tile)[:, None]
           + jnp.arange(T_win, dtype=jnp.int32)[None, :])                   # (nT, T_win)
    xw = jnp.transpose(x_pad[:, :, col], (0, 2, 1, 3))                      # (B, nT, Cin, T_win)
    z_col = z.astype(f32).reshape(B, z_dim, 1)

    const = lambda b, i: (0, 0)
    in_specs = [
        pl.BlockSpec((None, None, Cin, T_win), lambda b, i: (b, i, 0, 0)),  # x window (per tile)
        pl.BlockSpec((None, z_dim, 1), lambda b, i: (b, 0, 0)),             # z (per batch)
        pl.BlockSpec((Cout, ks * Cin), const),                              # parameters have
        pl.BlockSpec((Cout, 1), const),                                     # constant index maps
        pl.BlockSpec((Cout, ks * Cout), const),                             # -> DMA'd once and
        pl.BlockSpec((Cout, 1), const),                                     #    kept resident
        pl.BlockSpec((Cout, z_dim), const),
        pl.BlockSpec((Cout, z_dim), const),
        pl.BlockSpec((Cout, 1), const),
        pl.BlockSpec((Cout, 1), const),
    ]
    out_spec = pl.BlockSpec((None, Cout, T_tile), lambda b, i: (b, 0, i))

    # advisory cost estimate so XLA schedules the surrounding pad/window/slice ops sensibly
    th = T_tile + 2 * pad
    flops = int(B * nT * (2 * th * ks * Cin * Cout + 2 * T_tile * ks * Cout * Cout
                          + 4 * z_dim * Cout + 8 * T_tile * Cout))
    transcendentals = int(B * nT * th * Cout)
    param_bytes = sum(int(a.size) * a.dtype.itemsize
                      for a in (w1, b1, w2, shift, fwg, fwb, fbg, fbb))
    bytes_accessed = int(xw.size * xw.dtype.itemsize + z_col.size * z_col.dtype.itemsize
                         + B * Cout * T_padded * x.dtype.itemsize + param_bytes)

    out = pl.pallas_call(
        functools.partial(_film_resblk_kernel, ks=ks, pad=pad, seq_len=T, act=act),
        out_shape=jax.ShapeDtypeStruct((B, Cout, T_padded), x.dtype),
        grid=(B, nT),
        in_specs=in_specs,
        out_specs=out_spec,
        compiler_params=pltpu.CompilerParams(
            # both axes independent -> megacore-shardable (v7x) + double-buffered pipelining
            dimension_semantics=("parallel", "parallel"),
            # above the 16/32 MiB scoped defaults, safely under v7x's 64 MiB physical VMEM
            vmem_limit_bytes=48 * 1024 * 1024),
        cost_estimate=pl.CostEstimate(flops=flops, transcendentals=transcendentals,
                                      bytes_accessed=bytes_accessed),
    )(xw, z_col, w1, b1, w2, shift, fwg, fwb, fbg, fbb)

    return out if T_padded == T else out[:, :, :T]


# ======================== deterministic parameter init ===================================

def init_params(key, in_ch, out_ch, z_dim, ks):
    keys = jax.random.split(key, 10)

    def u(k, shape, scale=0.4):
        return jax.random.uniform(k, shape, jnp.float32, -scale, scale)

    return {
        # conv weights stored tap-major: w[k] is the (Cin, Cout) matrix of tap k
        "w_pre": u(keys[0], (ks, in_ch, out_ch)),
        "b_pre": u(keys[1], (1, out_ch)),
        "w_conv": u(keys[2], (ks, out_ch, out_ch)),
        "b_conv": u(keys[3], (1, out_ch)),
        # BatchNorm1d (inference-mode) affine + running statistics
        "bn_gamma": u(keys[4], (1, out_ch), 0.5) + 1.0,
        "bn_beta": u(keys[5], (1, out_ch)),
        "bn_mean": u(keys[6], (1, out_ch)),
        "bn_var": jax.random.uniform(keys[7], (1, out_ch), jnp.float32, 0.5, 1.5),
        # FiLM.fc = Linear(z_dim, 2*out_ch), stored as (z_dim, 2*out_ch) (= weight.T)
        "fc_w": u(keys[8], (z_dim, 2 * out_ch)),
        "fc_b": u(keys[9], (1, 2 * out_ch)),
    }


# ======================== pure-JAX reference (independent formulation) ====================

def reference_forward(x, z, params, *, ks, act="relu", eps=1e-5):
    pad = ks // 2

    def conv1d(inp, w_kio, b):
        w_oik = jnp.transpose(w_kio, (2, 1, 0))          # (Cout, Cin, ks) PyTorch layout
        out = jax.lax.conv_general_dilated(
            inp, w_oik, window_strides=(1,), padding=[(pad, pad)],
            dimension_numbers=("NCH", "OIH", "NCH"))
        return out + b.reshape(1, -1, 1)

    h = jnp.tanh(conv1d(x, params["w_pre"], params["b_pre"]))
    y = conv1d(h, params["w_conv"], params["b_conv"])
    inv = jax.lax.rsqrt(params["bn_var"] + eps)
    y = ((y - params["bn_mean"].reshape(1, -1, 1))
         * (params["bn_gamma"] * inv).reshape(1, -1, 1)
         + params["bn_beta"].reshape(1, -1, 1))

    hfc = z @ params["fc_w"] + params["fc_b"]            # (B, 2*Cout)
    Cout = params["w_pre"].shape[-1]
    gamma = hfc[:, :Cout][:, :, None]
    beta = hfc[:, Cout:][:, :, None]
    y = (1.0 + gamma) * y + beta

    if act == "relu":
        y = jnp.maximum(y, 0.0)
    elif act == "tanh":
        y = jnp.tanh(y)
    return h + y


# ======================== main ============================================================

if __name__ == "__main__":
    def check(name, *, B, in_ch, out_ch, T, z_dim, ks, t_tile, mm_dtype, tol):
        key = jax.random.PRNGKey(0)
        kx, kz, kp = jax.random.split(key, 3)
        x = jax.random.normal(kx, (B, in_ch, T), jnp.float32)
        z = jax.random.normal(kz, (B, z_dim), jnp.float32)
        params = init_params(kp, in_ch, out_ch, z_dim, ks)

        fwd = jax.jit(functools.partial(film_res_blk_forward, ks=ks, act="relu",
                                        t_tile=t_tile, mm_dtype=mm_dtype))
        out = fwd(x, z, params)
        jax.block_until_ready(out)

        ref = reference_forward(x, z, params, ks=ks, act="relu")
        assert out.shape == (B, out_ch, T), (name, out.shape)
        err = float(jnp.max(jnp.abs(out - ref)))
        assert err < tol, f"{name}: max abs err {err:.3e} >= {tol}"

    # exact-math config (f32 matmul operands), single time tile
    check("f32_single_tile", B=2, in_ch=4, out_ch=8, T=16, z_dim=4, ks=3,
          t_tile=512, mm_dtype=jnp.float32, tol=1e-3)
    # multi-tile config: exercises the overlapping halo windows, boundary mask and tail padding
    check("f32_multi_tile", B=2, in_ch=4, out_ch=8, T=300, z_dim=4, ks=3,
          t_tile=128, mm_dtype=jnp.float32, tol=1e-3)
    # production config: bf16 MXU operands with f32 accumulation (looser tolerance)
    check("bf16_mxu", B=2, in_ch=4, out_ch=8, T=16, z_dim=4, ks=3,
          t_tile=512, mm_dtype=jnp.bfloat16, tol=2.5e-1)

    print("KERNEL_OK")
</pallas_src>

<mosaic_0001>
module attributes {stable_mosaic.version = 11 : i64} {
  func.func @_film_resblk_kernel(%arg0: i32, %arg1: i32, %arg2: memref<1x1x4x20xf32, #tpu.memory_space<vmem>>, %arg3: memref<1x4x1xf32, #tpu.memory_space<vmem>>, %arg4: memref<8x12xf32, #tpu.memory_space<vmem>>, %arg5: memref<8x1xf32, #tpu.memory_space<vmem>>, %arg6: memref<8x24xf32, #tpu.memory_space<vmem>>, %arg7: memref<8x1xf32, #tpu.memory_space<vmem>>, %arg8: memref<8x4xf32, #tpu.memory_space<vmem>>, %arg9: memref<8x4xf32, #tpu.memory_space<vmem>>, %arg10: memref<8x1xf32, #tpu.memory_space<vmem>>, %arg11: memref<8x1xf32, #tpu.memory_space<vmem>>, %arg12: memref<1x8x16xf32, #tpu.memory_space<vmem>>) attributes {dimension_semantics = [#tpu.dimension_semantics<parallel>, #tpu.dimension_semantics<parallel>], iteration_bounds = array<i64: 2, 1>, scalar_prefetch = 0 : i64, scratch_operands = 0 : i64, tpu.core_type = #tpu.core_type<tc>, window_params = [{transform_indices = @transform_0, window_bounds = array<i64: 1, 1, 4, 20>}, {transform_indices = @transform_1, window_bounds = array<i64: 1, 4, 1>}, {pipeline_mode = #tpu.pipeline_mode<synchronous>, transform_indices = @transform_2, window_bounds = array<i64: 8, 12>}, {pipeline_mode = #tpu.pipeline_mode<synchronous>, transform_indices = @transform_3, window_bounds = array<i64: 8, 1>}, {pipeline_mode = #tpu.pipeline_mode<synchronous>, transform_indices = @transform_4, window_bounds = array<i64: 8, 24>}, {pipeline_mode = #tpu.pipeline_mode<synchronous>, transform_indices = @transform_5, window_bounds = array<i64: 8, 1>}, {pipeline_mode = #tpu.pipeline_mode<synchronous>, transform_indices = @transform_6, window_bounds = array<i64: 8, 4>}, {pipeline_mode = #tpu.pipeline_mode<synchronous>, transform_indices = @transform_7, window_bounds = array<i64: 8, 4>}, {pipeline_mode = #tpu.pipeline_mode<synchronous>, transform_indices = @transform_8, window_bounds = array<i64: 8, 1>}, {pipeline_mode = #tpu.pipeline_mode<synchronous>, transform_indices = @transform_9, window_bounds = array<i64: 8, 1>}, {transform_indices = @transform_10, window_bounds = array<i64: 1, 8, 16>}]} {
    %c0 = arith.constant 0 : index
    %c0_0 = arith.constant 0 : index
    %c0_1 = arith.constant 0 : index
    %c0_2 = arith.constant 0 : index
    %0 = vector.load %arg2[%c0, %c0_0, %c0_1, %c0_2] : memref<1x1x4x20xf32, #tpu.memory_space<vmem>>, vector<1x1x4x20xf32>
    %1 = vector.shape_cast %0 : vector<1x1x4x20xf32> to vector<4x20xf32>
    %2 = vector.extract_strided_slice %1 {offsets = [0, 0], sizes = [4, 18], strides = [1, 1]} : vector<4x20xf32> to vector<4x18xf32>
    %3 = vector.extract_strided_slice %1 {offsets = [0, 1], sizes = [4, 18], strides = [1, 1]} : vector<4x20xf32> to vector<4x18xf32>
    %4 = vector.extract_strided_slice %1 {offsets = [0, 2], sizes = [4, 18], strides = [1, 1]} : vector<4x20xf32> to vector<4x18xf32>
    %5 = tpu.concatenate %2, %3, %4 in 0 : vector<4x18xf32>, vector<4x18xf32>, vector<4x18xf32> -> vector<12x18xf32>
    %c0_3 = arith.constant 0 : index
    %c0_4 = arith.constant 0 : index
    %6 = vector.load %arg4[%c0_3, %c0_4] : memref<8x12xf32, #tpu.memory_space<vmem>>, vector<8x12xf32>
    %cst = arith.constant dense<0.000000e+00> : vector<8x18xf32>
    %7 = tpu.matmul %6, %5, %cst {dimension_numbers = #tpu.dot_dimension_numbers<[1], [0], [0], [1], [0, 0, 1, 1], [], []>} : vector<8x12xf32>, vector<12x18xf32>, vector<8x18xf32> -> vector<8x18xf32>
    %c0_5 = arith.constant 0 : index
    %c0_6 = arith.constant 0 : index
    %8 = vector.load %arg5[%c0_5, %c0_6] : memref<8x1xf32, #tpu.memory_space<vmem>>, vector<8x1xf32>
    %9 = vector.broadcast %8 : vector<8x1xf32> to vector<8x18xf32>
    %10 = arith.addf %7, %9 : vector<8x18xf32>
    %11 = math.tanh %10 : vector<8x18xf32>
    %c16_i32 = arith.constant 16 : i32
    %12 = arith.muli %arg1, %c16_i32 : i32
    %c1_i32 = arith.constant 1 : i32
    %13 = arith.subi %12, %c1_i32 : i32
    %14 = tpu.iota {dimensions = array<i32: 1>} : vector<1x18xi32>
    %15 = vector.broadcast %13 : i32 to vector<1x18xi32>
    %16 = arith.addi %15, %14 : vector<1x18xi32>
    %c0_i32 = arith.constant 0 : i32
    %17 = vector.broadcast %c0_i32 : i32 to vector<1x18xi32>
    %18 = arith.cmpi sge, %16, %17 : vector<1x18xi32>
    %c16_i32_7 = arith.constant 16 : i32
    %19 = vector.broadcast %c16_i32_7 : i32 to vector<1x18xi32>
    %20 = arith.cmpi slt, %16, %19 : vector<1x18xi32>
    %21 = arith.andi %18, %20 : vector<1x18xi1>
    %cst_8 = arith.constant 0.000000e+00 : f32
    %22 = vector.shape_cast %21 : vector<1x18xi1> to vector<1x18xi1>
    %23 = vector.broadcast %22 : vector<1x18xi1> to vector<8x18xi1>
    %24 = vector.broadcast %cst_8 : f32 to vector<8x18xf32>
    %25 = arith.select %23, %11, %24 : vector<8x18xi1>, vector<8x18xf32>
    %26 = vector.extract_strided_slice %25 {offsets = [0, 0], sizes = [8, 16], strides = [1, 1]} : vector<8x18xf32> to vector<8x16xf32>
    %27 = vector.extract_strided_slice %25 {offsets = [0, 1], sizes = [8, 16], strides = [1, 1]} : vector<8x18xf32> to vector<8x16xf32>
    %28 = vector.extract_strided_slice %25 {offsets = [0, 2], sizes = [8, 16], strides = [1, 1]} : vector<8x18xf32> to vector<8x16xf32>
    %29 = tpu.concatenate %26, %27, %28 in 0 : vector<8x16xf32>, vector<8x16xf32>, vector<8x16xf32> -> vector<24x16xf32>
    %c0_9 = arith.constant 0 : index
    %c0_10 = arith.constant 0 : index
    %30 = vector.load %arg6[%c0_9, %c0_10] : memref<8x24xf32, #tpu.memory_space<vmem>>, vector<8x24xf32>
    %cst_11 = arith.constant dense<0.000000e+00> : vector<8x16xf32>
    %31 = tpu.matmul %30, %29, %cst_11 {dimension_numbers = #tpu.dot_dimension_numbers<[1], [0], [0], [1], [0, 0, 1, 1], [], []>} : vector<8x24xf32>, vector<24x16xf32>, vector<8x16xf32> -> vector<8x16xf32>
    %c0_12 = arith.constant 0 : index
    %c0_13 = arith.constant 0 : index
    %32 = vector.load %arg7[%c0_12, %c0_13] : memref<8x1xf32, #tpu.memory_space<vmem>>, vector<8x1xf32>
    %33 = vector.broadcast %32 : vector<8x1xf32> to vector<8x16xf32>
    %34 = arith.addf %31, %33 : vector<8x16xf32>
    %c0_14 = arith.constant 0 : index
    %c0_15 = arith.constant 0 : index
    %c0_16 = arith.constant 0 : index
    %35 = vector.load %arg3[%c0_14, %c0_15, %c0_16] : memref<1x4x1xf32, #tpu.memory_space<vmem>>, vector<1x4x1xf32>
    %36 = vector.shape_cast %35 : vector<1x4x1xf32> to vector<4x1xf32>
    %c0_17 = arith.constant 0 : index
    %c0_18 = arith.constant 0 : index
    %37 = vector.load %arg8[%c0_17, %c0_18] : memref<8x4xf32, #tpu.memory_space<vmem>>, vector<8x4xf32>
    %cst_19 = arith.constant dense<0.000000e+00> : vector<8x1xf32>
    %38 = tpu.matmul %37, %36, %cst_19 {dimension_numbers = #tpu.dot_dimension_numbers<[1], [0], [0], [1], [0, 0, 1, 1], [], []>} : vector<8x4xf32>, vector<4x1xf32>, vector<8x1xf32> -> vector<8x1xf32>
    %c0_20 = arith.constant 0 : index
    %c0_21 = arith.constant 0 : index
    %39 = vector.load %arg10[%c0_20, %c0_21] : memref<8x1xf32, #tpu.memory_space<vmem>>, vector<8x1xf32>
    %40 = arith.addf %38, %39 : vector<8x1xf32>
    %c0_22 = arith.constant 0 : index
    %c0_23 = arith.constant 0 : index
    %41 = vector.load %arg9[%c0_22, %c0_23] : memref<8x4xf32, #tpu.memory_space<vmem>>, vector<8x4xf32>
    %cst_24 = arith.constant dense<0.000000e+00> : vector<8x1xf32>
    %42 = tpu.matmul %41, %36, %cst_24 {dimension_numbers = #tpu.dot_dimension_numbers<[1], [0], [0], [1], [0, 0, 1, 1], [], []>} : vector<8x4xf32>, vector<4x1xf32>, vector<8x1xf32> -> vector<8x1xf32>
    %c0_25 = arith.constant 0 : index
    %c0_26 = arith.constant 0 : index
    %43 = vector.load %arg11[%c0_25, %c0_26] : memref<8x1xf32, #tpu.memory_space<vmem>>, vector<8x1xf32>
    %44 = arith.addf %42, %43 : vector<8x1xf32>
    %45 = vector.broadcast %40 : vector<8x1xf32> to vector<8x16xf32>
    %46 = arith.mulf %45, %34 : vector<8x16xf32>
    %47 = vector.broadcast %44 : vector<8x1xf32> to vector<8x16xf32>
    %48 = arith.addf %46, %47 : vector<8x16xf32>
    %cst_27 = arith.constant 0.000000e+00 : f32
    %49 = vector.broadcast %cst_27 : f32 to vector<8x16xf32>
    %50 = arith.maximumf %48, %49 : vector<8x16xf32>
    %51 = vector.extract_strided_slice %25 {offsets = [0, 1], sizes = [8, 16], strides = [1, 1]} : vector<8x18xf32> to vector<8x16xf32>
    %52 = arith.addf %51, %50 : vector<8x16xf32>
    %c0_28 = arith.constant 0 : index
    %c0_29 = arith.constant 0 : index
    %c0_30 = arith.constant 0 : index
    %53 = vector.load %arg12[%c0_28, %c0_29, %c0_30] : memref<1x8x16xf32, #tpu.memory_space<vmem>>, vector<1x8x16xf32>
    %54 = vector.shape_cast %53 : vector<1x8x16xf32> to vector<8x16xf32>
    %55 = vector.shape_cast %52 : vector<8x16xf32> to vector<1x8x16xf32>
    tpu.vector_store %arg12[%c0_28, %c0_29, %c0_30], %55 {strides = array<i32>} : memref<1x8x16xf32, #tpu.memory_space<vmem>>, vector<1x8x16xf32>,
    return
  }
  func.func @transform_0(%arg0: i32, %arg1: i32) -> (i32, i32, i32, i32) {
    %c0_i32 = arith.constant 0 : i32
    %c0_i32_0 = arith.constant 0 : i32
    %c0_i32_1 = arith.constant 0 : i32
    return %arg0, %arg1, %c0_i32, %c0_i32_0 : i32, i32, i32, i32
  }
  func.func @transform_1(%arg0: i32, %arg1: i32) -> (i32, i32, i32) {
    %c0_i32 = arith.constant 0 : i32
    %c0_i32_0 = arith.constant 0 : i32
    %c0_i32_1 = arith.constant 0 : i32
    return %arg0, %c0_i32, %c0_i32_0 : i32, i32, i32
  }
  func.func @transform_2(%arg0: i32, %arg1: i32) -> (i32, i32) {
    %c0_i32 = arith.constant 0 : i32
    %c0_i32_0 = arith.constant 0 : i32
    %c0_i32_1 = arith.constant 0 : i32
    return %c0_i32, %c0_i32_0 : i32, i32
  }
  func.func @transform_3(%arg0: i32, %arg1: i32) -> (i32, i32) {
    %c0_i32 = arith.constant 0 : i32
    %c0_i32_0 = arith.constant 0 : i32
    %c0_i32_1 = arith.constant 0 : i32
    return %c0_i32, %c0_i32_0 : i32, i32
  }
  func.func @transform_4(%arg0: i32, %arg1: i32) -> (i32, i32) {
    %c0_i32 = arith.constant 0 : i32
    %c0_i32_0 = arith.constant 0 : i32
    %c0_i32_1 = arith.constant 0 : i32
    return %c0_i32, %c0_i32_0 : i32, i32
  }
  func.func @transform_5(%arg0: i32, %arg1: i32) -> (i32, i32) {
    %c0_i32 = arith.constant 0 : i32
    %c0_i32_0 = arith.constant 0 : i32
    %c0_i32_1 = arith.constant 0 : i32
    return %c0_i32, %c0_i32_0 : i32, i32
  }
  func.func @transform_6(%arg0: i32, %arg1: i32) -> (i32, i32) {
    %c0_i32 = arith.constant 0 : i32
    %c0_i32_0 = arith.constant 0 : i32
    %c0_i32_1 = arith.constant 0 : i32
    return %c0_i32, %c0_i32_0 : i32, i32
  }
  func.func @transform_7(%arg0: i32, %arg1: i32) -> (i32, i32) {
    %c0_i32 = arith.constant 0 : i32
    %c0_i32_0 = arith.constant 0 : i32
    %c0_i32_1 = arith.constant 0 : i32
    return %c0_i32, %c0_i32_0 : i32, i32
  }
  func.func @transform_8(%arg0: i32, %arg1: i32) -> (i32, i32) {
    %c0_i32 = arith.constant 0 : i32
    %c0_i32_0 = arith.constant 0 : i32
    %c0_i32_1 = arith.constant 0 : i32
    return %c0_i32, %c0_i32_0 : i32, i32
  }
  func.func @transform_9(%arg0: i32, %arg1: i32) -> (i32, i32) {
    %c0_i32 = arith.constant 0 : i32
    %c0_i32_0 = arith.constant 0 : i32
    %c0_i32_1 = arith.constant 0 : i32
    return %c0_i32, %c0_i32_0 : i32, i32
  }
  func.func @transform_10(%arg0: i32, %arg1: i32) -> (i32, i32, i32) {
    %c0_i32 = arith.constant 0 : i32
    %c0_i32_0 = arith.constant 0 : i32
    return %arg0, %c0_i32, %arg1 : i32, i32, i32
  }
}

</mosaic_0001>

<bundles_post_ra>
// kernel: film_res_blk_forward.1
= control target key start
LH: loop header
LB: loop body
LE: loop exit
PB: predicated region body
PF: predicated region fallthrough
CT: control target
= control target key end

     0   :  { %s1310_s0 = inlined_call_operand.vmem [shape: f32[2,1,4,20], index: 0, kind: input, shape index: {}]   ;;  %s1311_s1 = inlined_call_operand.vmem [shape: f32[2,4,1], index: 1, kind: input, shape index: {}]   ;;  %s1312_s2 = inlined_call_operand.vmem [shape: f32[8,12], index: 2, kind: input, shape index: {}]   ;;  %s1313_s3 = inlined_call_operand.vmem [shape: f32[8,1], index: 3, kind: input, shape index: {}]   ;;  %s1314_s4 = inlined_call_operand.vmem [shape: f32[8,24], index: 4, kind: input, shape index: {}]   ;;  %s1315_s5 = inlined_call_operand.vmem [shape: f32[8,1], index: 5, kind: input, shape index: {}]   ;;  %s1316_s6 = inlined_call_operand.vmem [shape: f32[8,4], index: 6, kind: input, shape index: {}]   ;;  %s1317_s7 = inlined_call_operand.vmem [shape: f32[8,4], index: 7, kind: input, shape index: {}]   ;;  %s1318_s8 = inlined_call_operand.vmem [shape: f32[8,1], index: 8, kind: input, shape index: {}]   ;;  %s1319_s9 = inlined_call_operand.vmem [shape: f32[8,1], index: 9, kind: input, shape index: {}]   ;;  %s1320_s10 = inlined_call_operand.hbm [shape: f32[2,8,16], index: 10, kind: output, shape index: {}]  }
   0x1   :  { %1321 = sst [smem:[#allocation5_spill]] %s1310_s0 }
   0x2   :  { %15 = vsyncpa [#allocation3], 0 }
   0x3   :  { %17 = vsyncpa [#allocation3 + $0x1], 0  ;;  %s1144_s13 = smov 0   ;;  %s1146_s14 = smov 0  }
   0x4   :  { %s1148_s15 = smov 0   ;;  %s1150_s16 = smov 0  }
   0x5   :  { %s1152_s17 = smov 0   ;;  %s1154_s18 = smov 0  }
   0x6 LB: > { %s868_s19 = sadd.s32 4294967295, %s1078_s18   ;;  %s869_s20 = sadd.s32 4294967294, %s1078_s18   ;;  %s1078_s18 = sphi %s1154_s18, %s23_s18   ;;  %s1074_s17 = sphi %s1152_s17, %s1329_s17   ;;  %s1070_s16 = sphi %s1150_s16, %s1328_s16   ;;  %s1066_s15 = sphi %s1148_s15, %s1327_s15   ;;  %s1062_s14 = sphi %s1146_s14, %s1326_s14   ;;  %s1058_s13 = sphi %s1144_s13, %s1325_s13  }
   0x7   : > { %s35_s21 = sadd.s32 1, %s1074_s17  ;;  %s266_s22 = sadd.s32 1, %s1066_s15 }
   0x8   : > { %p37_p0 = scmp.ge.s32.totalorder %s35_s21, 2  ;;  %p276_p1 = scmp.ne.s32.totalorder %s1066_s15, %s1062_s14 }
   0x9   : > { %p277_p2 = scmp.eq.s32.totalorder %s868_s19, 1  ;;  %p282_p3 = scmp.ne.s32.totalorder %s1062_s14, %s1058_s13 }
   0xa   : > { %s1331_s21 = smov (%p37_p0, %s35_s21), 0  ;;  %p283_p5 = scmp.eq.s32.totalorder %s869_s20, 1 }
   0xb   : > { %p1184_p4 = por %p277_p2, %p276_p1  ;;  %s261_s24 = ssub.s32 %s1074_s17, %s1331_s21 }
   0xc   : > { %p872_p6 = scmp.ge.s32.totalorder %s1078_s18, 1  ;;  %p264_p7 = scmp.eq.s32.totalorder %s261_s24, 0 }
   0xd   : > { %p1191_p8 = por %p283_p5, %p282_p3  ;;  %p342_p9 = scmp.lt.s32.totalorder %s1078_s18, 3 }
   0xe   : > { %s1197_s26 = scalar_select %p264_p7, %s1066_s15, %s266_s22  }
   0xf   : > { %p343_p10 = pnand %p872_p6, %p342_p9 }
  0x10   : > { %p386_p11 = scmp.lt.s32.totalorder (!%p343_p10), %s1070_s16, 1  ;;  %v1080_v0 = vmov (!%p343_p10), 0.0|0.0   ;;  %vm1081_vm0 = vmmov (!%p343_p10), 0   ;;  %v1082_v1 = vmov (!%p343_p10), 0.0   ;;  %s1324_s0 = sld [smem:[#allocation5_spill]] (!%p343_p10)  ;;  %v408_v2 = vld [vmem:[%s1313_s3] sm:$0xff] (!%p343_p10)  ;;  %v493_v13 = vlaneseq (!%p343_p10) }
  0x11   : > { %346 = sbr.rel (%p343_p10) target bundleno = 1099 (0x44b), region = 60  ;;  %925 = vmatprep.subr.bf16.mxu0 (!%p343_p10), %v1080_v0  ;;  %929 = vmatprep.subr.bf16.mxu1 (!%p343_p10), %v1080_v0  ;;  %v1083_v4 = vmov (!%p343_p10), 0   ;;  %s1084_s20 = smov (!%p343_p10), 127   ;;  %vm405_vm1 = vcmask (!%p343_p10), 1043456   ;;  %vm1086_vm2 = vmmov (!%p343_p10), 1   ;;  %v407_v10 = vld [vmem:[%s1312_s2] sm:$0xff] (!%p343_p10) }
  0x12   : > { %903 = vmatprep.mubr.msk.f32.mxu0 (!%p343_p10), %vm1081_vm0, %v1082_v1  ;;  %912 = vmatprep.mubr.msk.f32.mxu1 (!%p343_p10), %vm1081_vm0, %v1082_v1  ;;  %s1085_s22 = smov (!%p343_p10), 126   ;;  %vm927_vm3 = vmpackc.low (!%p343_p10), %vm405_vm1, %vm1086_vm2  ;;  %vm414_vm4 = vcmask (!%p343_p10), 97280   ;;  %v592_v11 = vld [vmem:[%s1316_s6] sm:$0xff] (!%p343_p10)  ;;  %vm594_vm5 = vcmask (!%p343_p10), 31744   ;;  %v494_v16 = vand.u32 (!%p343_p10), 127, %v493_v13  ;;  %vm517_vm10 = vcmask (!%p343_p10), 195584  }
  0x13   : > { %996 = vset.pattern.permute.xlu1 (!%p343_p10), %v1083_v4  ;;  %997 = vset.pattern.permute.xlu0 (!%p343_p10), %v1083_v4  ;;  %v511_v22 = vld [vmem:[%s1315_s5] sm:$0xff] (!%p343_p10)  ;;  %s1087_s24 = smov (!%p343_p10), 1   ;;  %vm768_vm11 = vcmask (!%p343_p10), 130048  }
  0x14   : > { %411 = vperm.xlu1 (!%p343_p10), %996, %v408_v2   ;;  %v496_v19 = vadd.s32 (!%p343_p10), 4294967295, %v494_v16  ;;  %v593_v23 = vld [vmem:[%s1318_s8] sm:$0xff] (!%p343_p10) }
  0x15   : > { %v510_v29 = vld [vmem:[%s1314_s4] sm:$0xff] (!%p343_p10) }
  0x16   : > { %vm497_vm6 = vcmp.ge.s32.totalorder (!%p343_p10), %v496_v19, 0  ;;  %vm498_vm7 = vcmp.lt.s32.totalorder (!%p343_p10), %v496_v19, 16  ;;  %v671_v31 = vld [vmem:[%s1317_s7] sm:$0xff] (!%p343_p10) }
  0x17   : > { %vm499_vm8 = vmand (!%p343_p10), %vm497_vm6, %vm498_vm7  ;;  %v672_v34 = vld [vmem:[%s1319_s9] sm:$0xff] (!%p343_p10) }
  0x18   : > { %s1201_s27 = scalar_select %p386_p11, %s1070_s16, 1  ;;  %vm931_vm9 = vmpackc.low %vm1086_vm2, %vm499_vm8 }
  0x1a   : > { %s874_s28 = sshll.u32 %s1201_s27, 2  ;;  %s383_s27 = sand.u32 1, %s1062_s14  }
  0x1b   : > { %s392_s11 = scalar_lea.vmem %s1324_s0, %s874_s28  ;;  %s873_s29 = sshll.u32 %s383_s27, 3 }
  0x1c   : > { %v397_v3 = vld [vmem:[%s392_s11] sm:$0xf]  ;;  %s396_s11 = scalar_lea.vmem %s1311_s1, %s874_s28  ;;  %s385_s30 = scalar_lea.vmem [#allocation2], %s873_s29 }
  0x1d   : > { %v399_v5 = vrot.slane %v397_v3, 4  ;;  %v591_v12 = vld [vmem:[%s396_s11] sm:$0xf]  ;;  %s785_s11 = sshll.u32 %s385_s30, 4  ;;  %s1265_s11 = int_to_ptr.vmem [resolvable:$true] %s785_s11 }
  0x1f   : > { %400 = vrot.lane.b32.xlu0 %v399_v5, %s1084_s20 }
  0x23   : > { %403 = vrot.lane.b32.xlu0 %v397_v3, %s1085_s22 }
  0x91   : > { %v401_v6 = vpop.permute.xlu0 %400 }
  0x92   : > { %v406_v7 = vsel %vm405_vm1, %v397_v3, %v401_v6 }
  0x93   : > { %v412_v14 = vpop.permute.xlu1 %411 }
  0x95   : > { %v404_v8 = vpop.permute.xlu0 %403 }
  0x96   : > { %v926_v9 = vpack.c.bf16 %v404_v8, %v406_v7 }
  0x98   : > { %928 = vmatpush3.bf16.msk.msra.mxu0 %vm927_vm3, %v926_v9 }
  0x99   : > { %915 = vmatprep.subr.mxu0 %v1082_v1 }
  0x9b   : > { %904 = vmatmul.mubr.msk.f32.vlgmr.msra.gmra.mrb[0].mxu0 %vm414_vm4, %v407_v10 }
  0x9c   : > { %917 = vmatprep.mubr.msk.f32.mxu0 %vm1081_vm0, %v1082_v1  ;;  %916 = vmatpush3.msk.msra.mxu0 %vm405_vm1, %v591_v12 }
  0x9f   : > { %918 = vmatmul.mubr.msk.f32.vlgmr.msra.gmra.mrb[2].mxu0 %vm594_vm5, %v592_v11 }
 0x16e   : > { %v486_v15 = vpop.f32.mrb[0].mxu0 }
 0x16f   : > { %v487_v17 = vadd.f32 %v486_v15, %v412_v14  ;;  %v905_v18 = vpop.f32.mrb[1].mxu0 }
 0x171   : > { %998 = vtanh.f32 %v487_v17 }
 0x172   : > { %v667_v24 = vpop.f32.mrb[2].mxu0 }
 0x173   : > { %v668_v25 = vadd.f32 %v667_v24, %v593_v23  ;;  %v919_v26 = vpop.f32.mrb[3].mxu0 }
 0x17b   : > { %v999_v20 = vpop.eup %998 }
 0x17c   : > { %v502_v21 = vsel %vm499_vm8, %v999_v20, 0.0 }
 0x17d   : > { %507 = vrot.lane.b32.xlu0 %v502_v21, %s1085_s22  ;;  %504 = vrot.lane.b32.xlu1 %v502_v21, %s1084_s20  ;;  %s885_s22 = sshll.u32 %s1070_s16, 7  ;;  %s1088_s16 = smov [#allocation2]  }
 0x17e   : > { %s1263_s28 = scalar_lea.hbm %s1320_s10, %s885_s22  ;;  %s1004_s29 = sshll.u32 %s1088_s16, 4  ;;  %s1005_s29 = int_to_ptr.vmem [resolvable:$false] %s1004_s29 }
 0x17f   : > { %s1006_s0 = scalar_lea.vmem %s1005_s29, 256  ;;  %p1007_p1 = scmp.lt.s32.totalorder %s1265_s11, %s1005_s29 }
 0x181   : > { %514 = vperm.xlu1 %996, %v511_v22   ;;  %748 = vperm.xlu0 %997, %v668_v25  }
 0x1ef   : > { %v505_v27 = vpop.permute.xlu1 %504  ;;  %v508_v30 = vpop.permute.xlu0 %507 }
 0x1f0   : > { %v930_v28 = vpack.c.bf16 %v505_v27, %v999_v20 }
 0x1f2   : > { %932 = vmatpush3.bf16.msk.msra.mxu1 %vm931_vm9, %v930_v28 }
 0x1f3   : > { %910 = vmatprep.subr.mxu1 %v1082_v1 }
 0x1f6   : > { %911 = vmatpush3.msra.mxu1 %v508_v30 }
 0x1f7   : > { %913 = vmatmul.mubr.msk.f32.vlgmr.msra.gmra.mrb[0].mxu1 %vm517_vm10, %v510_v29  ;;  %920 = vmatprep.subr.mxu1 %v1082_v1 }
 0x1f8   : > { %921 = vmatpush3.msk.msra.mxu1 %vm405_vm1, %v591_v12  ;;  %922 = vmatprep.mubr.msk.f32.mxu1 %vm1081_vm0, %v1082_v1 }
 0x1fb   : > { %923 = vmatmul.mubr.msk.f32.vlgmr.msra.gmra.mrb[2].mxu1 %vm594_vm5, %v671_v31 }
 0x200   : > { %v515_v38 = vpop.permute.xlu1 %514  ;;  %v749_v40 = vpop.permute.xlu0 %748 }
 0x2ca   : > { %v587_v32 = vpop.f32.mrb[0].mxu1 }
 0x2cb   : > { %v914_v33 = vpop.f32.mrb[1].mxu1  ;;  %v588_v39 = vadd.f32 %v587_v32, %v515_v38 }
 0x2cd   : > { %v751_v41 = vmul.f32 %v749_v40, %v588_v39 }
 0x2ce   : > { %v742_v35 = vpop.f32.mrb[2].mxu1 }
 0x2cf   : > { %v743_v36 = vadd.f32 %v742_v35, %v672_v34  ;;  %v924_v37 = vpop.f32.mrb[3].mxu1 }
 0x2d1   : > { %754 = vperm.xlu1 %996, %v743_v36  }
 0x350   : > { %v755_v42 = vpop.permute.xlu1 %754 }
 0x351   : > { %v757_v43 = vadd.f32 %v755_v42, %v751_v41 }
 0x353   : > { %v758_v44 = vmax.f32 %v757_v43, 0.0 }
 0x355   : > { %760 = vrot.lane.b32.xlu1 %v758_v44, %s1087_s24  ;;  %s771_s24 = scalar_lea.sflag [#allocation3], %s383_s27 }
 0x3c7   : > { %v761_v45 = vpop.permute.xlu1 %760 }
 0x3c8   : > { %v763_v46 = vadd.f32 %v761_v45, %v502_v21 }
 0x3ca   : > { %765 = vrot.lane.b32.xlu0 %v763_v46, %s1084_s20  ;;  %s1000_s20 = scalar_lea.vmem %s1265_s11, 128 }
 0x3cb   : > { %p1001_p12 = scmp.ne.s32.totalorder %s1265_s11, %s1000_s20  ;;  %p1008_p2 = scmp.lt.s32.totalorder %s1006_s0, %s1000_s20 }
 0x3cd   : > { %p1002_p13 = pnand %p1001_p12, %p1184_p4  ;;  %p1009_p3 = por %p1008_p2, %p1007_p1 }
 0x3cf   : > { %p1003_p0 = pneg %p1002_p13 }
 0x3d1   : > { %p1010_p5 = pnand %p1009_p3, %p1003_p0 }
 0x43c   : > { %v766_v47 = vpop.permute.xlu0 %765 }
 0x43d   : > { %769 = vst.msk [vmem:[%s385_s30] sm:$0xff] %vm768_vm11, %v766_v47 }
 0x43e   : > { %1013 = shalt.err (!%p1010_p5)
}
 0x43f   : > { %s1014_s27 = scalar_lea.hbm %s1263_s28, 128  ;;  %s1018_s12 = scalar_lea.hbm %s1320_s10, 256 }
 0x440   : > { %p1015_p6 = scmp.ne.s32.totalorder %s1263_s28, %s1014_s27  ;;  %p1019_p10 = scmp.lt.u32.totalorder %s1263_s28, %s1320_s10 }
 0x441   : > { %p1020_p11 = scmp.lt.u32.totalorder %s1018_s12, %s1014_s27  ;;  %p1022_p13 = scmp.lt.u32.totalorder %s1014_s27, %s1263_s28 }
 0x442   : > { %p1016_p7 = pnand %p1015_p6, %p1184_p4 }
 0x443   : > { %p1021_p12 = por %p1020_p11, %p1019_p10 }
 0x444   : > { %p1017_p9 = pneg %p1016_p7 }
 0x445   : > { %p1023_p0 = por %p1022_p13, %p1021_p12 }
 0x447   : > { %p1024_p1 = pnand %p1023_p0, %p1017_p9 }
 0x449   : > { %1027 = shalt.err (!%p1024_p1)
}
 0x44a   : > { %933 = dma.vmem_to_hbm [thread:$0]  (%p1184_p4), %s1265_s11, 128, %s1263_s28, %s771_s24  }
 0x44b PF: > { %p939_p2 = scmp.ge.s32.totalorder %s1078_s18, 2  ;;  %s797_s0 = sand.u32 1, %s1058_s13  }
 0x44c   : > { %s798_s20 = scalar_lea.sflag [#allocation3], %s797_s0 }
 0x44d   : > { %p936_p3 = pnand %p939_p2, %p1191_p8 }
 0x44f   : > { %1053 = dma.done.wait (!%p936_p3), %s798_s20, 128  }
 0x450   : > { %1055 = vsyncadd (!%p936_p3), %s798_s20, 4294967168  ;;  %s23_s18 = sadd.s32 1, %s1078_s18   ;;  %s1325_s13 = smov %s1062_s14 }
 0x451   : > { %p20_p5 = scmp.ge.s32.totalorder %s23_s18, 4   ;;  %s1326_s14 = smov %s1066_s15 }
 0x452   : > { %s1327_s15 = smov %s1197_s26  ;;  %s1328_s16 = smov %s1074_s17 }
 0x453   : > { %s1329_s17 = smov %s1331_s21  ;;  %22 = sbr.rel (!%p20_p5) target bundleno = 6 (0x6), region = 98 }
 0x45a   :  { %803 = vsyncpa [#allocation3], 1 }
 0x45b   :  { %805 = vsyncpa [#allocation3 + $0x1], 1 }

</bundles_post_ra>
